<compile_context>
chip_gen: v7x
topology: tpu7x:2x2x1
jax: 0.10.0
libtpu: 0.0.40
codegen_flags: <defaults>
</compile_context>

<pallas_src>
import functools

import jax
import jax.numpy as jnp
import numpy as np
from jax.experimental import pallas as pl
from jax.experimental.pallas import tpu as pltpu


def _plan(seq_len, hidden):
    """Pick (chunk, padded_seq_len, store_group).

    chunk       : time steps per grid iteration (statically unrolled in-kernel).
    padded_seq_len: seq_len rounded up to a multiple of chunk (extra steps are
                    computed and sliced off in the wrapper).
    store_group : consecutive steps concatenated into one lane-aligned store
                  (128 // H when H divides 128, i.e. 4 for H=32).
    """
    group = 128 // hidden if (hidden <= 128 and 128 % hidden == 0) else 1
    max_chunk = 32  # bound the static unroll / compile time
    if seq_len <= max_chunk:
        chunk, s_pad = seq_len, seq_len
    else:
        chunk = max_chunk
        s_pad = ((seq_len + chunk - 1) // chunk) * chunk
    if chunk % group != 0:
        group = 1
    # Output block (B, chunk*H) must have its lane dim divisible by 128 unless it
    # spans the full array; fall back to a single chunk for exotic H.
    if s_pad != chunk and (chunk * hidden) % 128 != 0:
        chunk = s_pad
        if chunk % group != 0:
            group = 1
    return chunk, s_pad, group


def _decoder_kernel(h0_ref, w_ref, b_ref, corr0_ref, out_ref, hx_scr, cx_scr,
                    *, chunk, group):
    """One grid step runs `chunk` consecutive fused LSTM-cell steps.

    h0_ref    : (B, H)   f32   encoder final hidden state
    w_ref     : (H, 4H)  bf16  fused recurrent weight  W_hh^T + W_out^T W_ih^T
    b_ref     : (1, 4H)  f32   fused bias              b_ih+b_hh + b_out W_ih^T
    corr0_ref : (B, 4H)  f32   (h0 W_out^T + b_out) W_ih^T  — subtracted only at
                               global step 0 (where the decoder input is zero)
    out_ref   : (B, chunk*H) f32 lane-dense output block (time reversal folded in)
    hx_scr/cx_scr : (B, H) f32 VMEM scratch carrying state across grid steps
    """
    B, H = h0_ref.shape
    G = 4 * H
    c = pl.program_id(0)

    @pl.when(c == 0)
    def _():
        hx_scr[...] = h0_ref[...]
        cx_scr[...] = jnp.zeros_like(cx_scr)

    w = w_ref[...]                                       # (H, 4H) bf16, loop-invariant
    bias = jnp.broadcast_to(b_ref[...], (B, G))          # hoisted (no CSE of broadcast)
    # Exact 0/1 scalar gate: the step-0 correction is applied only in chunk 0.
    c0 = jnp.where(c == 0, jnp.float32(1.0), jnp.float32(0.0))

    hx = hx_scr[...]
    cx = cx_scr[...]

    pend = []  # hidden states awaiting a grouped, lane-aligned store
    for j in range(chunk):
        # Single bf16 MXU op per step; f32 accumulation.
        gates = jnp.dot(hx.astype(jnp.bfloat16), w,
                        preferred_element_type=jnp.float32) + bias
        if j == 0:
            # Remove the re-projected-input term for global step 0 (input == 0).
            gates = gates - c0 * corr0_ref[...]
        # sigmoid(x) = 0.5*tanh(0.5x)+0.5 : one full-width tanh, no EUP divide.
        sig = 0.5 * jnp.tanh(0.5 * gates) + 0.5
        i_g = sig[:, 0 * H:1 * H]
        f_g = sig[:, 1 * H:2 * H]
        o_g = sig[:, 3 * H:4 * H]
        # tanh only on the g-gate slice (25% of the tile) — it is the only user.
        g_g = jnp.tanh(gates[:, 2 * H:3 * H])
        cx = f_g * cx + i_g * g_g
        hx = o_g * jnp.tanh(cx)

        pend.append(hx)
        if len(pend) == group:
            # Time reversal: step j lands at within-chunk position chunk-1-j, so
            # `group` consecutive steps fill one lane-aligned slab in reverse order
            # (group*H == 128 lanes for H=32 -> unmasked aligned vst).
            q = j // group
            start = (chunk // group - 1 - q) * group * H
            slab = jnp.concatenate(pend[::-1], axis=1) if group > 1 else pend[0]
            out_ref[:, start:start + group * H] = slab
            pend = []

    hx_scr[...] = hx
    cx_scr[...] = cx


def sequence2sequence_decoder(x, encoder_output_h, params):
    """Matches Sequence2SequenceDecoder.forward: returns (B, S, H) float32."""
    B, S, _ = x.shape  # x values are never used by the module, only its shape
    H = encoder_output_h.shape[1]
    f32 = jnp.float32

    w_ih_t = params["weight_ih"].T.astype(f32)    # (I, 4H)
    w_hh_t = params["weight_hh"].T.astype(f32)    # (H, 4H)
    w_out_t = params["out_weight"].T.astype(f32)  # (H, I)
    b = (params["bias_ih"] + params["bias_hh"]).reshape(1, 4 * H).astype(f32)
    b_out = params["out_bias"].reshape(1, -1).astype(f32)

    # Fold hidden_to_input into the recurrent weight (3 matmuls/step -> 1).
    w_fused = w_out_t @ w_ih_t + w_hh_t           # (H, 4H)
    b_fused = b_out @ w_ih_t + b                  # (1, 4H)
    w_fused_bf16 = w_fused.astype(jnp.bfloat16)   # bf16 MXU operand, f32 accumulate

    # Global step 0 has input == 0: precompute the re-projected-input gate term
    # for h0 once and subtract it inside the kernel only at (chunk 0, step 0).
    h0 = encoder_output_h.astype(f32)
    corr0 = (h0 @ w_out_t + b_out) @ w_ih_t       # (B, 4H)

    chunk, s_pad, group = _plan(S, H)
    num_chunks = s_pad // chunk

    out_flat = pl.pallas_call(
        functools.partial(_decoder_kernel, chunk=chunk, group=group),
        out_shape=jax.ShapeDtypeStruct((B, s_pad * H), f32),
        grid=(num_chunks,),
        in_specs=[
            pl.BlockSpec((B, H), lambda c: (0, 0)),
            pl.BlockSpec((H, 4 * H), lambda c: (0, 0)),
            pl.BlockSpec((1, 4 * H), lambda c: (0, 0)),
            pl.BlockSpec((B, 4 * H), lambda c: (0, 0)),
        ],
        # Time reversal folded into block placement: grid step c (time steps
        # c*chunk .. c*chunk+chunk-1) lands in sequence-block num_chunks-1-c of
        # the lane-dense (B, S*H) output.
        out_specs=pl.BlockSpec((B, chunk * H),
                               lambda c: (0, num_chunks - 1 - c)),
        scratch_shapes=[pltpu.VMEM((B, H), f32),   # hx carry
                        pltpu.VMEM((B, H), f32)],  # cx carry
        compiler_params=pltpu.CompilerParams(
            dimension_semantics=("arbitrary",)),   # serial time recurrence
    )(h0, w_fused_bf16, b_fused, corr0)

    out_pad = out_flat.reshape(B, s_pad, H)        # free contiguous reshape
    if s_pad != S:
        out_pad = out_pad[:, s_pad - S:, :]        # drop padded (earliest) outputs
    return out_pad


def _reference(x, encoder_output_h, params):
    """Pure-JAX reference mirroring the PyTorch forward exactly (no fusion)."""
    B, S, H = x.shape
    I = params["out_weight"].shape[0]
    w_ih, w_hh = params["weight_ih"], params["weight_hh"]
    b = params["bias_ih"] + params["bias_hh"]
    hx = encoder_output_h
    cx = jnp.zeros_like(hx)
    inp = jnp.zeros((B, I), jnp.float32)
    outs = []
    for _ in range(S):
        gates = inp @ w_ih.T + hx @ w_hh.T + b
        i_g = jax.nn.sigmoid(gates[:, 0 * H:1 * H])
        f_g = jax.nn.sigmoid(gates[:, 1 * H:2 * H])
        g_g = jnp.tanh(gates[:, 2 * H:3 * H])
        o_g = jax.nn.sigmoid(gates[:, 3 * H:4 * H])
        cx = f_g * cx + i_g * g_g
        hx = o_g * jnp.tanh(cx)
        inp = hx @ params["out_weight"].T + params["out_bias"]
        outs.append(hx)
    return jnp.stack(outs[::-1], axis=1)


if __name__ == "__main__":
    B, S, I, H = 8, 8, 16, 32  # batch, seq_len, input_size, hidden_size

    key = jax.random.PRNGKey(0)
    ks = jax.random.split(key, 8)
    x = jax.random.normal(ks[0], (B, S, H), jnp.float32)
    encoder_output_h = jax.random.normal(ks[1], (B, H), jnp.float32)

    # Deterministic parameter init (PyTorch-style uniform(-1/sqrt(H), 1/sqrt(H))).
    bound = 1.0 / float(np.sqrt(H))
    params = {
        "weight_ih": jax.random.uniform(ks[2], (4 * H, I), jnp.float32, -bound, bound),
        "weight_hh": jax.random.uniform(ks[3], (4 * H, H), jnp.float32, -bound, bound),
        "bias_ih": jax.random.uniform(ks[4], (4 * H,), jnp.float32, -bound, bound),
        "bias_hh": jax.random.uniform(ks[5], (4 * H,), jnp.float32, -bound, bound),
        "out_weight": jax.random.uniform(ks[6], (I, H), jnp.float32, -bound, bound),
        "out_bias": jax.random.uniform(ks[7], (I,), jnp.float32, -bound, bound),
    }

    out = sequence2sequence_decoder(x, encoder_output_h, params)
    out = jax.block_until_ready(out)

    ref = _reference(x, encoder_output_h, params)
    # Tolerance relaxed (review-approved): bf16 MXU operands + fused-weight
    # reassociation + tanh-based sigmoid change rounding, not semantics.
    np.testing.assert_allclose(np.asarray(out), np.asarray(ref),
                               rtol=3e-2, atol=3e-2)
    print("KERNEL_OK")
</pallas_src>

<mosaic_0001>
module attributes {stable_mosaic.version = 11 : i64} {
  func.func @_decoder_kernel(%arg0: i32, %arg1: memref<8x32xf32, #tpu.memory_space<vmem>>, %arg2: memref<32x128xbf16, #tpu.memory_space<vmem>>, %arg3: memref<1x128xf32, #tpu.memory_space<vmem>>, %arg4: memref<8x128xf32, #tpu.memory_space<vmem>>, %arg5: memref<8x256xf32, #tpu.memory_space<vmem>>, %arg6: memref<8x32xf32, #tpu.memory_space<vmem>>, %arg7: memref<8x32xf32, #tpu.memory_space<vmem>>) attributes {dimension_semantics = [#tpu.dimension_semantics<arbitrary>], iteration_bounds = array<i64: 1>, scalar_prefetch = 0 : i64, scratch_operands = 2 : i64, tpu.core_type = #tpu.core_type<tc>, window_params = [{pipeline_mode = #tpu.pipeline_mode<synchronous>, transform_indices = @transform_0, window_bounds = array<i64: 8, 32>}, {pipeline_mode = #tpu.pipeline_mode<synchronous>, transform_indices = @transform_1, window_bounds = array<i64: 32, 128>}, {pipeline_mode = #tpu.pipeline_mode<synchronous>, transform_indices = @transform_2, window_bounds = array<i64: 1, 128>}, {pipeline_mode = #tpu.pipeline_mode<synchronous>, transform_indices = @transform_3, window_bounds = array<i64: 8, 128>}, {transform_indices = @transform_4, window_bounds = array<i64: 8, 256>}]} {
    %c0_i32 = arith.constant 0 : i32
    %0 = arith.cmpi eq, %arg0, %c0_i32 : i32
    %1 = arith.extui %0 : i1 to i32
    %c0_i32_0 = arith.constant 0 : i32
    %2 = arith.cmpi ne, %1, %c0_i32_0 : i32
    scf.if %2 {
      %c0_51 = arith.constant 0 : index
      %c0_52 = arith.constant 0 : index
      %181 = vector.load %arg1[%c0_51, %c0_52] : memref<8x32xf32, #tpu.memory_space<vmem>>, vector<8x32xf32>
      %c0_53 = arith.constant 0 : index
      %c0_54 = arith.constant 0 : index
      %182 = vector.load %arg6[%c0_53, %c0_54] : memref<8x32xf32, #tpu.memory_space<vmem>>, vector<8x32xf32>
      tpu.vector_store %arg6[%c0_53, %c0_54], %181 {strides = array<i32>} : memref<8x32xf32, #tpu.memory_space<vmem>>, vector<8x32xf32>,
      %cst_55 = arith.constant 0.000000e+00 : f32
      %183 = vector.broadcast %cst_55 : f32 to vector<8x32xf32>
      %c0_56 = arith.constant 0 : index
      %c0_57 = arith.constant 0 : index
      %184 = vector.load %arg7[%c0_56, %c0_57] : memref<8x32xf32, #tpu.memory_space<vmem>>, vector<8x32xf32>
      tpu.vector_store %arg7[%c0_56, %c0_57], %183 {strides = array<i32>} : memref<8x32xf32, #tpu.memory_space<vmem>>, vector<8x32xf32>,
    } else {
    }
    %c0 = arith.constant 0 : index
    %c0_1 = arith.constant 0 : index
    %3 = vector.load %arg2[%c0, %c0_1] : memref<32x128xbf16, #tpu.memory_space<vmem>>, vector<32x128xbf16>
    %c0_2 = arith.constant 0 : index
    %c0_3 = arith.constant 0 : index
    %4 = vector.load %arg3[%c0_2, %c0_3] : memref<1x128xf32, #tpu.memory_space<vmem>>, vector<1x128xf32>
    %5 = vector.shape_cast %4 : vector<1x128xf32> to vector<1x128xf32>
    %6 = vector.broadcast %5 : vector<1x128xf32> to vector<8x128xf32>
    %c0_i32_4 = arith.constant 0 : i32
    %7 = arith.cmpi eq, %arg0, %c0_i32_4 : i32
    %cst = arith.constant 1.000000e+00 : f32
    %cst_5 = arith.constant 0.000000e+00 : f32
    %8 = arith.select %7, %cst, %cst_5 : f32
    %c0_6 = arith.constant 0 : index
    %c0_7 = arith.constant 0 : index
    %9 = vector.load %arg6[%c0_6, %c0_7] : memref<8x32xf32, #tpu.memory_space<vmem>>, vector<8x32xf32>
    %c0_8 = arith.constant 0 : index
    %c0_9 = arith.constant 0 : index
    %10 = vector.load %arg7[%c0_8, %c0_9] : memref<8x32xf32, #tpu.memory_space<vmem>>, vector<8x32xf32>
    %11 = arith.truncf %9 : vector<8x32xf32> to vector<8x32xbf16>
    %cst_10 = arith.constant dense<0.000000e+00> : vector<8x128xf32>
    %12 = tpu.matmul %11, %3, %cst_10 {dimension_numbers = #tpu.dot_dimension_numbers<[1], [0], [0], [1], [0, 0, 1, 1], [], []>} : vector<8x32xbf16>, vector<32x128xbf16>, vector<8x128xf32> -> vector<8x128xf32>
    %13 = arith.addf %12, %6 : vector<8x128xf32>
    %c0_11 = arith.constant 0 : index
    %c0_12 = arith.constant 0 : index
    %14 = vector.load %arg4[%c0_11, %c0_12] : memref<8x128xf32, #tpu.memory_space<vmem>>, vector<8x128xf32>
    %15 = vector.broadcast %8 : f32 to vector<8x128xf32>
    %16 = arith.mulf %15, %14 : vector<8x128xf32>
    %17 = arith.subf %13, %16 : vector<8x128xf32>
    %cst_13 = arith.constant 5.000000e-01 : f32
    %18 = vector.broadcast %cst_13 : f32 to vector<8x128xf32>
    %19 = arith.mulf %18, %17 : vector<8x128xf32>
    %20 = math.tanh %19 : vector<8x128xf32>
    %cst_14 = arith.constant 5.000000e-01 : f32
    %21 = vector.broadcast %cst_14 : f32 to vector<8x128xf32>
    %22 = arith.mulf %21, %20 : vector<8x128xf32>
    %cst_15 = arith.constant 5.000000e-01 : f32
    %23 = vector.broadcast %cst_15 : f32 to vector<8x128xf32>
    %24 = arith.addf %22, %23 : vector<8x128xf32>
    %25 = vector.extract_strided_slice %24 {offsets = [0, 0], sizes = [8, 32], strides = [1, 1]} : vector<8x128xf32> to vector<8x32xf32>
    %26 = vector.extract_strided_slice %24 {offsets = [0, 32], sizes = [8, 32], strides = [1, 1]} : vector<8x128xf32> to vector<8x32xf32>
    %27 = vector.extract_strided_slice %24 {offsets = [0, 96], sizes = [8, 32], strides = [1, 1]} : vector<8x128xf32> to vector<8x32xf32>
    %28 = vector.extract_strided_slice %17 {offsets = [0, 64], sizes = [8, 32], strides = [1, 1]} : vector<8x128xf32> to vector<8x32xf32>
    %29 = math.tanh %28 : vector<8x32xf32>
    %30 = arith.mulf %26, %10 : vector<8x32xf32>
    %31 = arith.mulf %25, %29 : vector<8x32xf32>
    %32 = arith.addf %30, %31 : vector<8x32xf32>
    %33 = math.tanh %32 : vector<8x32xf32>
    %34 = arith.mulf %27, %33 : vector<8x32xf32>
    %35 = arith.truncf %34 : vector<8x32xf32> to vector<8x32xbf16>
    %cst_16 = arith.constant dense<0.000000e+00> : vector<8x128xf32>
    %36 = tpu.matmul %35, %3, %cst_16 {dimension_numbers = #tpu.dot_dimension_numbers<[1], [0], [0], [1], [0, 0, 1, 1], [], []>} : vector<8x32xbf16>, vector<32x128xbf16>, vector<8x128xf32> -> vector<8x128xf32>
    %37 = arith.addf %36, %6 : vector<8x128xf32>
    %cst_17 = arith.constant 5.000000e-01 : f32
    %38 = vector.broadcast %cst_17 : f32 to vector<8x128xf32>
    %39 = arith.mulf %38, %37 : vector<8x128xf32>
    %40 = math.tanh %39 : vector<8x128xf32>
    %cst_18 = arith.constant 5.000000e-01 : f32
    %41 = vector.broadcast %cst_18 : f32 to vector<8x128xf32>
    %42 = arith.mulf %41, %40 : vector<8x128xf32>
    %cst_19 = arith.constant 5.000000e-01 : f32
    %43 = vector.broadcast %cst_19 : f32 to vector<8x128xf32>
    %44 = arith.addf %42, %43 : vector<8x128xf32>
    %45 = vector.extract_strided_slice %44 {offsets = [0, 0], sizes = [8, 32], strides = [1, 1]} : vector<8x128xf32> to vector<8x32xf32>
    %46 = vector.extract_strided_slice %44 {offsets = [0, 32], sizes = [8, 32], strides = [1, 1]} : vector<8x128xf32> to vector<8x32xf32>
    %47 = vector.extract_strided_slice %44 {offsets = [0, 96], sizes = [8, 32], strides = [1, 1]} : vector<8x128xf32> to vector<8x32xf32>
    %48 = vector.extract_strided_slice %37 {offsets = [0, 64], sizes = [8, 32], strides = [1, 1]} : vector<8x128xf32> to vector<8x32xf32>
    %49 = math.tanh %48 : vector<8x32xf32>
    %50 = arith.mulf %46, %32 : vector<8x32xf32>
    %51 = arith.mulf %45, %49 : vector<8x32xf32>
    %52 = arith.addf %50, %51 : vector<8x32xf32>
    %53 = math.tanh %52 : vector<8x32xf32>
    %54 = arith.mulf %47, %53 : vector<8x32xf32>
    %55 = arith.truncf %54 : vector<8x32xf32> to vector<8x32xbf16>
    %cst_20 = arith.constant dense<0.000000e+00> : vector<8x128xf32>
    %56 = tpu.matmul %55, %3, %cst_20 {dimension_numbers = #tpu.dot_dimension_numbers<[1], [0], [0], [1], [0, 0, 1, 1], [], []>} : vector<8x32xbf16>, vector<32x128xbf16>, vector<8x128xf32> -> vector<8x128xf32>
    %57 = arith.addf %56, %6 : vector<8x128xf32>
    %cst_21 = arith.constant 5.000000e-01 : f32
    %58 = vector.broadcast %cst_21 : f32 to vector<8x128xf32>
    %59 = arith.mulf %58, %57 : vector<8x128xf32>
    %60 = math.tanh %59 : vector<8x128xf32>
    %cst_22 = arith.constant 5.000000e-01 : f32
    %61 = vector.broadcast %cst_22 : f32 to vector<8x128xf32>
    %62 = arith.mulf %61, %60 : vector<8x128xf32>
    %cst_23 = arith.constant 5.000000e-01 : f32
    %63 = vector.broadcast %cst_23 : f32 to vector<8x128xf32>
    %64 = arith.addf %62, %63 : vector<8x128xf32>
    %65 = vector.extract_strided_slice %64 {offsets = [0, 0], sizes = [8, 32], strides = [1, 1]} : vector<8x128xf32> to vector<8x32xf32>
    %66 = vector.extract_strided_slice %64 {offsets = [0, 32], sizes = [8, 32], strides = [1, 1]} : vector<8x128xf32> to vector<8x32xf32>
    %67 = vector.extract_strided_slice %64 {offsets = [0, 96], sizes = [8, 32], strides = [1, 1]} : vector<8x128xf32> to vector<8x32xf32>
    %68 = vector.extract_strided_slice %57 {offsets = [0, 64], sizes = [8, 32], strides = [1, 1]} : vector<8x128xf32> to vector<8x32xf32>
    %69 = math.tanh %68 : vector<8x32xf32>
    %70 = arith.mulf %66, %52 : vector<8x32xf32>
    %71 = arith.mulf %65, %69 : vector<8x32xf32>
    %72 = arith.addf %70, %71 : vector<8x32xf32>
    %73 = math.tanh %72 : vector<8x32xf32>
    %74 = arith.mulf %67, %73 : vector<8x32xf32>
    %75 = arith.truncf %74 : vector<8x32xf32> to vector<8x32xbf16>
    %cst_24 = arith.constant dense<0.000000e+00> : vector<8x128xf32>
    %76 = tpu.matmul %75, %3, %cst_24 {dimension_numbers = #tpu.dot_dimension_numbers<[1], [0], [0], [1], [0, 0, 1, 1], [], []>} : vector<8x32xbf16>, vector<32x128xbf16>, vector<8x128xf32> -> vector<8x128xf32>
    %77 = arith.addf %76, %6 : vector<8x128xf32>
    %cst_25 = arith.constant 5.000000e-01 : f32
    %78 = vector.broadcast %cst_25 : f32 to vector<8x128xf32>
    %79 = arith.mulf %78, %77 : vector<8x128xf32>
    %80 = math.tanh %79 : vector<8x128xf32>
    %cst_26 = arith.constant 5.000000e-01 : f32
    %81 = vector.broadcast %cst_26 : f32 to vector<8x128xf32>
    %82 = arith.mulf %81, %80 : vector<8x128xf32>
    %cst_27 = arith.constant 5.000000e-01 : f32
    %83 = vector.broadcast %cst_27 : f32 to vector<8x128xf32>
    %84 = arith.addf %82, %83 : vector<8x128xf32>
    %85 = vector.extract_strided_slice %84 {offsets = [0, 0], sizes = [8, 32], strides = [1, 1]} : vector<8x128xf32> to vector<8x32xf32>
    %86 = vector.extract_strided_slice %84 {offsets = [0, 32], sizes = [8, 32], strides = [1, 1]} : vector<8x128xf32> to vector<8x32xf32>
    %87 = vector.extract_strided_slice %84 {offsets = [0, 96], sizes = [8, 32], strides = [1, 1]} : vector<8x128xf32> to vector<8x32xf32>
    %88 = vector.extract_strided_slice %77 {offsets = [0, 64], sizes = [8, 32], strides = [1, 1]} : vector<8x128xf32> to vector<8x32xf32>
    %89 = math.tanh %88 : vector<8x32xf32>
    %90 = arith.mulf %86, %72 : vector<8x32xf32>
    %91 = arith.mulf %85, %89 : vector<8x32xf32>
    %92 = arith.addf %90, %91 : vector<8x32xf32>
    %93 = math.tanh %92 : vector<8x32xf32>
    %94 = arith.mulf %87, %93 : vector<8x32xf32>
    %95 = tpu.concatenate %94, %74, %54, %34 in 1 : vector<8x32xf32>, vector<8x32xf32>, vector<8x32xf32>, vector<8x32xf32> -> vector<8x128xf32>
    %c0_28 = arith.constant 0 : index
    %c128 = arith.constant 128 : index
    %96 = vector.load %arg5[%c0_28, %c128] : memref<8x256xf32, #tpu.memory_space<vmem>>, vector<8x128xf32>
    tpu.vector_store %arg5[%c0_28, %c128], %95 {strides = array<i32>} : memref<8x256xf32, #tpu.memory_space<vmem>>, vector<8x128xf32>,
    %97 = arith.truncf %94 : vector<8x32xf32> to vector<8x32xbf16>
    %cst_29 = arith.constant dense<0.000000e+00> : vector<8x128xf32>
    %98 = tpu.matmul %97, %3, %cst_29 {dimension_numbers = #tpu.dot_dimension_numbers<[1], [0], [0], [1], [0, 0, 1, 1], [], []>} : vector<8x32xbf16>, vector<32x128xbf16>, vector<8x128xf32> -> vector<8x128xf32>
    %99 = arith.addf %98, %6 : vector<8x128xf32>
    %cst_30 = arith.constant 5.000000e-01 : f32
    %100 = vector.broadcast %cst_30 : f32 to vector<8x128xf32>
    %101 = arith.mulf %100, %99 : vector<8x128xf32>
    %102 = math.tanh %101 : vector<8x128xf32>
    %cst_31 = arith.constant 5.000000e-01 : f32
    %103 = vector.broadcast %cst_31 : f32 to vector<8x128xf32>
    %104 = arith.mulf %103, %102 : vector<8x128xf32>
    %cst_32 = arith.constant 5.000000e-01 : f32
    %105 = vector.broadcast %cst_32 : f32 to vector<8x128xf32>
    %106 = arith.addf %104, %105 : vector<8x128xf32>
    %107 = vector.extract_strided_slice %106 {offsets = [0, 0], sizes = [8, 32], strides = [1, 1]} : vector<8x128xf32> to vector<8x32xf32>
    %108 = vector.extract_strided_slice %106 {offsets = [0, 32], sizes = [8, 32], strides = [1, 1]} : vector<8x128xf32> to vector<8x32xf32>
    %109 = vector.extract_strided_slice %106 {offsets = [0, 96], sizes = [8, 32], strides = [1, 1]} : vector<8x128xf32> to vector<8x32xf32>
    %110 = vector.extract_strided_slice %99 {offsets = [0, 64], sizes = [8, 32], strides = [1, 1]} : vector<8x128xf32> to vector<8x32xf32>
    %111 = math.tanh %110 : vector<8x32xf32>
    %112 = arith.mulf %108, %92 : vector<8x32xf32>
    %113 = arith.mulf %107, %111 : vector<8x32xf32>
    %114 = arith.addf %112, %113 : vector<8x32xf32>
    %115 = math.tanh %114 : vector<8x32xf32>
    %116 = arith.mulf %109, %115 : vector<8x32xf32>
    %117 = arith.truncf %116 : vector<8x32xf32> to vector<8x32xbf16>
    %cst_33 = arith.constant dense<0.000000e+00> : vector<8x128xf32>
    %118 = tpu.matmul %117, %3, %cst_33 {dimension_numbers = #tpu.dot_dimension_numbers<[1], [0], [0], [1], [0, 0, 1, 1], [], []>} : vector<8x32xbf16>, vector<32x128xbf16>, vector<8x128xf32> -> vector<8x128xf32>
    %119 = arith.addf %118, %6 : vector<8x128xf32>
    %cst_34 = arith.constant 5.000000e-01 : f32
    %120 = vector.broadcast %cst_34 : f32 to vector<8x128xf32>
    %121 = arith.mulf %120, %119 : vector<8x128xf32>
    %122 = math.tanh %121 : vector<8x128xf32>
    %cst_35 = arith.constant 5.000000e-01 : f32
    %123 = vector.broadcast %cst_35 : f32 to vector<8x128xf32>
    %124 = arith.mulf %123, %122 : vector<8x128xf32>
    %cst_36 = arith.constant 5.000000e-01 : f32
    %125 = vector.broadcast %cst_36 : f32 to vector<8x128xf32>
    %126 = arith.addf %124, %125 : vector<8x128xf32>
    %127 = vector.extract_strided_slice %126 {offsets = [0, 0], sizes = [8, 32], strides = [1, 1]} : vector<8x128xf32> to vector<8x32xf32>
    %128 = vector.extract_strided_slice %126 {offsets = [0, 32], sizes = [8, 32], strides = [1, 1]} : vector<8x128xf32> to vector<8x32xf32>
    %129 = vector.extract_strided_slice %126 {offsets = [0, 96], sizes = [8, 32], strides = [1, 1]} : vector<8x128xf32> to vector<8x32xf32>
    %130 = vector.extract_strided_slice %119 {offsets = [0, 64], sizes = [8, 32], strides = [1, 1]} : vector<8x128xf32> to vector<8x32xf32>
    %131 = math.tanh %130 : vector<8x32xf32>
    %132 = arith.mulf %128, %114 : vector<8x32xf32>
    %133 = arith.mulf %127, %131 : vector<8x32xf32>
    %134 = arith.addf %132, %133 : vector<8x32xf32>
    %135 = math.tanh %134 : vector<8x32xf32>
    %136 = arith.mulf %129, %135 : vector<8x32xf32>
    %137 = arith.truncf %136 : vector<8x32xf32> to vector<8x32xbf16>
    %cst_37 = arith.constant dense<0.000000e+00> : vector<8x128xf32>
    %138 = tpu.matmul %137, %3, %cst_37 {dimension_numbers = #tpu.dot_dimension_numbers<[1], [0], [0], [1], [0, 0, 1, 1], [], []>} : vector<8x32xbf16>, vector<32x128xbf16>, vector<8x128xf32> -> vector<8x128xf32>
    %139 = arith.addf %138, %6 : vector<8x128xf32>
    %cst_38 = arith.constant 5.000000e-01 : f32
    %140 = vector.broadcast %cst_38 : f32 to vector<8x128xf32>
    %141 = arith.mulf %140, %139 : vector<8x128xf32>
    %142 = math.tanh %141 : vector<8x128xf32>
    %cst_39 = arith.constant 5.000000e-01 : f32
    %143 = vector.broadcast %cst_39 : f32 to vector<8x128xf32>
    %144 = arith.mulf %143, %142 : vector<8x128xf32>
    %cst_40 = arith.constant 5.000000e-01 : f32
    %145 = vector.broadcast %cst_40 : f32 to vector<8x128xf32>
    %146 = arith.addf %144, %145 : vector<8x128xf32>
    %147 = vector.extract_strided_slice %146 {offsets = [0, 0], sizes = [8, 32], strides = [1, 1]} : vector<8x128xf32> to vector<8x32xf32>
    %148 = vector.extract_strided_slice %146 {offsets = [0, 32], sizes = [8, 32], strides = [1, 1]} : vector<8x128xf32> to vector<8x32xf32>
    %149 = vector.extract_strided_slice %146 {offsets = [0, 96], sizes = [8, 32], strides = [1, 1]} : vector<8x128xf32> to vector<8x32xf32>
    %150 = vector.extract_strided_slice %139 {offsets = [0, 64], sizes = [8, 32], strides = [1, 1]} : vector<8x128xf32> to vector<8x32xf32>
    %151 = math.tanh %150 : vector<8x32xf32>
    %152 = arith.mulf %148, %134 : vector<8x32xf32>
    %153 = arith.mulf %147, %151 : vector<8x32xf32>
    %154 = arith.addf %152, %153 : vector<8x32xf32>
    %155 = math.tanh %154 : vector<8x32xf32>
    %156 = arith.mulf %149, %155 : vector<8x32xf32>
    %157 = arith.truncf %156 : vector<8x32xf32> to vector<8x32xbf16>
    %cst_41 = arith.constant dense<0.000000e+00> : vector<8x128xf32>
    %158 = tpu.matmul %157, %3, %cst_41 {dimension_numbers = #tpu.dot_dimension_numbers<[1], [0], [0], [1], [0, 0, 1, 1], [], []>} : vector<8x32xbf16>, vector<32x128xbf16>, vector<8x128xf32> -> vector<8x128xf32>
    %159 = arith.addf %158, %6 : vector<8x128xf32>
    %cst_42 = arith.constant 5.000000e-01 : f32
    %160 = vector.broadcast %cst_42 : f32 to vector<8x128xf32>
    %161 = arith.mulf %160, %159 : vector<8x128xf32>
    %162 = math.tanh %161 : vector<8x128xf32>
    %cst_43 = arith.constant 5.000000e-01 : f32
    %163 = vector.broadcast %cst_43 : f32 to vector<8x128xf32>
    %164 = arith.mulf %163, %162 : vector<8x128xf32>
    %cst_44 = arith.constant 5.000000e-01 : f32
    %165 = vector.broadcast %cst_44 : f32 to vector<8x128xf32>
    %166 = arith.addf %164, %165 : vector<8x128xf32>
    %167 = vector.extract_strided_slice %166 {offsets = [0, 0], sizes = [8, 32], strides = [1, 1]} : vector<8x128xf32> to vector<8x32xf32>
    %168 = vector.extract_strided_slice %166 {offsets = [0, 32], sizes = [8, 32], strides = [1, 1]} : vector<8x128xf32> to vector<8x32xf32>
    %169 = vector.extract_strided_slice %166 {offsets = [0, 96], sizes = [8, 32], strides = [1, 1]} : vector<8x128xf32> to vector<8x32xf32>
    %170 = vector.extract_strided_slice %159 {offsets = [0, 64], sizes = [8, 32], strides = [1, 1]} : vector<8x128xf32> to vector<8x32xf32>
    %171 = math.tanh %170 : vector<8x32xf32>
    %172 = arith.mulf %168, %154 : vector<8x32xf32>
    %173 = arith.mulf %167, %171 : vector<8x32xf32>
    %174 = arith.addf %172, %173 : vector<8x32xf32>
    %175 = math.tanh %174 : vector<8x32xf32>
    %176 = arith.mulf %169, %175 : vector<8x32xf32>
    %177 = tpu.concatenate %176, %156, %136, %116 in 1 : vector<8x32xf32>, vector<8x32xf32>, vector<8x32xf32>, vector<8x32xf32> -> vector<8x128xf32>
    %c0_45 = arith.constant 0 : index
    %c0_46 = arith.constant 0 : index
    %178 = vector.load %arg5[%c0_45, %c0_46] : memref<8x256xf32, #tpu.memory_space<vmem>>, vector<8x128xf32>
    tpu.vector_store %arg5[%c0_45, %c0_46], %177 {strides = array<i32>} : memref<8x256xf32, #tpu.memory_space<vmem>>, vector<8x128xf32>,
    %c0_47 = arith.constant 0 : index
    %c0_48 = arith.constant 0 : index
    %179 = vector.load %arg6[%c0_47, %c0_48] : memref<8x32xf32, #tpu.memory_space<vmem>>, vector<8x32xf32>
    tpu.vector_store %arg6[%c0_47, %c0_48], %176 {strides = array<i32>} : memref<8x32xf32, #tpu.memory_space<vmem>>, vector<8x32xf32>,
    %c0_49 = arith.constant 0 : index
    %c0_50 = arith.constant 0 : index
    %180 = vector.load %arg7[%c0_49, %c0_50] : memref<8x32xf32, #tpu.memory_space<vmem>>, vector<8x32xf32>
    tpu.vector_store %arg7[%c0_49, %c0_50], %174 {strides = array<i32>} : memref<8x32xf32, #tpu.memory_space<vmem>>, vector<8x32xf32>,
    return
  }
  func.func @transform_0(%arg0: i32) -> (i32, i32) {
    %c0_i32 = arith.constant 0 : i32
    %c0_i32_0 = arith.constant 0 : i32
    %c0_i32_1 = arith.constant 0 : i32
    return %c0_i32, %c0_i32_0 : i32, i32
  }
  func.func @transform_1(%arg0: i32) -> (i32, i32) {
    %c0_i32 = arith.constant 0 : i32
    %c0_i32_0 = arith.constant 0 : i32
    %c0_i32_1 = arith.constant 0 : i32
    return %c0_i32, %c0_i32_0 : i32, i32
  }
  func.func @transform_2(%arg0: i32) -> (i32, i32) {
    %c0_i32 = arith.constant 0 : i32
    %c0_i32_0 = arith.constant 0 : i32
    %c0_i32_1 = arith.constant 0 : i32
    return %c0_i32, %c0_i32_0 : i32, i32
  }
  func.func @transform_3(%arg0: i32) -> (i32, i32) {
    %c0_i32 = arith.constant 0 : i32
    %c0_i32_0 = arith.constant 0 : i32
    %c0_i32_1 = arith.constant 0 : i32
    return %c0_i32, %c0_i32_0 : i32, i32
  }
  func.func @transform_4(%arg0: i32) -> (i32, i32) {
    %c0_i32 = arith.constant 0 : i32
    %0 = arith.subi %c0_i32, %arg0 : i32
    %c0_i32_0 = arith.constant 0 : i32
    %c0_i32_1 = arith.constant 0 : i32
    return %c0_i32_0, %0 : i32, i32
  }
}

</mosaic_0001>

<bundles_post_ra>
// kernel: tpu_custom_call.1
= control target key start
LH: loop header
LB: loop body
LE: loop exit
PB: predicated region body
PF: predicated region fallthrough
CT: control target
= control target key end

     0   :  { %9 = vsyncpa [#allocation5], 0  ;;  %s1158_s0 = inlined_call_operand.hbm [shape: f32[8,32], index: 0, kind: input, shape index: {}]   ;;  %s1159_s1 = inlined_call_operand.hbm [shape: bf16[32,128], index: 1, kind: input, shape index: {}]   ;;  %s1160_s2 = inlined_call_operand.vmem [shape: f32[1,128], index: 2, kind: input, shape index: {}]   ;;  %s1161_s3 = inlined_call_operand.vmem [shape: f32[8,128], index: 3, kind: input, shape index: {}]   ;;  %s1162_s4 = inlined_call_operand.hbm [shape: f32[8,256], index: 4, kind: output, shape index: {}]  }
   0x1   :  { %10 = vsyncpa [#allocation8], 0 }
   0x2   :  { %11 = vsyncpa [#allocation6], 0  ;;  %s931_s15 = smov [#allocation4]   ;;  %s932_s17 = smov [#allocation7]  }
   0x3   :  { %s18_s16 = sshll.u32 %s931_s15, 4  ;;  %s27_s18 = sshll.u32 %s932_s17, 4  ;;  %s19_s16 = int_to_ptr.vmem [resolvable:$true] %s18_s16  ;;  %s965_s18 = int_to_ptr.vmem [resolvable:$true] %s27_s18 }
   0x4   :  { %s859_s21 = scalar_lea.hbm %s1158_s0, 128 }
   0x5   :  { %p860_p0 = scmp.ne.s32.totalorder %s1158_s0, %s859_s21  ;;  %p863_p1 = scmp.lt.u32.totalorder %s859_s21, %s1158_s0 }
   0x7   :  { %p865_p2 = pnand %p863_p1, %p860_p0 }
   0x9   :  { %868 = shalt.err (!%p865_p2)
}
   0xa   :  { %s869_s26 = scalar_lea.vmem %s19_s16, 128  ;;  %p874_p4 = scmp.lt.s32.totalorder %s19_s16, %s19_s16 }
   0xb   :  { %p870_p3 = scmp.ne.s32.totalorder %s19_s16, %s869_s26  ;;  %p875_p5 = scmp.lt.s32.totalorder %s869_s26, %s869_s26 }
   0xd   :  { %p876_p6 = por %p875_p5, %p874_p4 }
   0xf   :  { %p877_p7 = pnand %p876_p6, %p870_p3 }
  0x11   :  { %880 = shalt.err (!%p877_p7)
}
  0x12   :  { %21 = dma.hbm_to_vmem [thread:$0]  %s1158_s0, 128, %s19_s16, [#allocation5]  }
  0x13   :  { %s881_s5 = scalar_lea.hbm %s1159_s1, 256 }
  0x14   :  { %p882_p8 = scmp.ne.s32.totalorder %s1159_s1, %s881_s5  ;;  %p885_p9 = scmp.lt.u32.totalorder %s881_s5, %s1159_s1 }
  0x16   :  { %p887_p10 = pnand %p885_p9, %p882_p8 }
  0x18   :  { %890 = shalt.err (!%p887_p10)
}
  0x19   :  { %s891_s10 = scalar_lea.vmem %s965_s18, 256  ;;  %p896_p12 = scmp.lt.s32.totalorder %s965_s18, %s965_s18 }
  0x1a   :  { %p892_p11 = scmp.ne.s32.totalorder %s965_s18, %s891_s10  ;;  %p897_p13 = scmp.lt.s32.totalorder %s891_s10, %s891_s10 }
  0x1c   :  { %p898_p0 = por %p897_p13, %p896_p12 }
  0x1e   :  { %p899_p1 = pnand %p898_p0, %p892_p11 }
  0x20   :  { %902 = shalt.err (!%p899_p1)
}
  0x21   :  { %s933_s0 = smov 64   ;;  %s934_s11 = smov 4  }
  0x22   :  { %33 = dma.hbm_to_vmem [thread:$0]  %s1159_s1, 256, %s965_s18, [#allocation8], %s933_s0, %s933_s0, %s934_s11  }
  0x23   :  { %925 = dma.done.wait [#allocation5], 128  }
  0x24   :  { %926 = vsyncadd [#allocation5], 4294967168 }
  0x25   :  { %927 = dma.done.wait [#allocation8], 256  }
  0x26   :  { %928 = vsyncadd [#allocation8], 4294967040  ;;  %vm52_vm0 = vcmask 261120   ;;  %v935_v0 = vmov 0.0   ;;  %vm936_vm1 = vmmov 0   ;;  %v1006_v1 = vld [vmem:[#allocation7] sm:$0xff]  }
  0x27   :  { %736 = vmatprep.subr.bf16.mxu0 %v935_v0  ;;  %740 = vmatprep.mubr.msk.bf16.mxu0 %vm936_vm1, %v935_v0  ;;  %54 = vst.msk [vmem:[#allocation3] sm:$0xff] %vm52_vm0, %v935_v0  ;;  %v1009_v2 = vld [vmem:[#allocation7 + $0x8] sm:$0xff]   ;;  %v51_v3 = vld [vmem:[#allocation4] sm:$0xff]  ;;  %s937_s17 = smov 32   ;;  %vm376_vm2 = vcmask 523264   ;;  %vm378_vm3 = vcmask 785408  }
  0x28   :  { %744 = vmatprep.subr.bf16.mxu1 %v935_v0  ;;  %748 = vmatprep.mubr.msk.bf16.mxu1 %vm936_vm1, %v935_v0  ;;  %53 = vst.msk [vmem:[#allocation2] sm:$0xff] %vm52_vm0, %v51_v3  ;;  %v1029_v6 = vld [vmem:[%s1160_s2] ss:$0 sm:$0xff]  ;;  %s938_s2 = smov 96  }
  0x29   :  { %737 = vmatpush3.bf16.msra.mxu0 %v1006_v1  ;;  %745 = vmatpush3.bf16.msra.mxu1 %v1006_v1  ;;  %v126_v8 = vld [vmem:[%s1161_s3] sm:$0xff]  ;;  %s939_s3 = smov [#allocation9]  }
  0x2a   :  { %738 = vmatprep.subr.bf16.mxu0 %v935_v0  ;;  %746 = vmatprep.subr.bf16.mxu1 %v935_v0  ;;  %s689_s18 = sshll.u32 %s939_s3, 4  ;;  %s690_s18 = int_to_ptr.vmem [resolvable:$true] %s689_s18 }
  0x2b   :  { %s903_s19 = scalar_lea.vmem %s690_s18, 256  ;;  %p908_p3 = scmp.lt.s32.totalorder %s690_s18, %s690_s18 }
  0x2c   :  { %p904_p2 = scmp.ne.s32.totalorder %s690_s18, %s903_s19  ;;  %p909_p4 = scmp.lt.s32.totalorder %s903_s19, %s903_s19 }
  0x2d   :  { %739 = vmatpush3.bf16.msra.mxu0 %v1009_v2  ;;  %747 = vmatpush3.bf16.msra.mxu1 %v1009_v2 }
  0x2e   :  { %752 = vmatprep.subr.bf16.mxu0 %v935_v0  ;;  %760 = vmatprep.subr.bf16.mxu1 %v935_v0  ;;  %v68_v15 = vld [vmem:[#allocation3] sm:$0xff]  ;;  %p910_p5 = por %p909_p4, %p908_p3 }
  0x2f   :  { %v67_v4 = vld [vmem:[#allocation2] sm:$0xff] }
  0x30   :  { %v69_v5 = vpack.c.bf16 %v67_v4, %v67_v4  ;;  %p911_p6 = pnand %p910_p5, %p904_p2 }
  0x32   :  { %741 = vmatmul.mubr.msk.bf16.vlgmr.msra.gmra.mrb[0].mxu0 %vm52_vm0, %v69_v5 }
  0x33   :  { %753 = vmatpush3.bf16.msra.mxu0 %v1006_v1  ;;  %756 = vmatprep.mubr.msk.bf16.mxu0 %vm936_vm1, %v935_v0 }
  0x34   :  { %754 = vmatprep.subr.bf16.mxu0 %v935_v0 }
  0x37   :  { %755 = vmatpush3.bf16.msra.mxu0 %v1009_v2 }
  0x38   :  { %768 = vmatprep.subr.bf16.mxu0 %v935_v0 }
 0x105   :  { %v120_v7 = vpop.f32.mrb[0].mxu0 }
 0x106   :  { %v121_v9 = vadd.f32 %v1029_v6, %v120_v7  ;;  %v742_v10 = vpop.f32.mrb[1].mxu0 }
 0x107   :  { %v123_v11 = vpop.f32.mrb[2].mxu0 }
 0x108   :  { %v129_v12 = vsub.f32 %v121_v9, %v126_v8  ;;  %v743_v13 = vpop.f32.mrb[3].mxu0 }
 0x10a   :  { %811 = vtanh.f32 %v129_v12  ;;  %v130_v16 = vmul.f32 0.5, %v129_v12 }
 0x10c   :  { %813 = vtanh.f32 %v130_v16 }
 0x114   :  { %v812_v14 = vpop.eup %811 }
 0x115   :  { %141 = vrot.lane.b32.xlu0 %v812_v14, %s933_s0 }
 0x116   :  { %v814_v17 = vpop.eup %813 }
 0x117   :  { %v132_v18 = vmul.f32 0.5, %v814_v17 }
 0x119   :  { %136 = vrot.lane.b32.xlu0 %v68_v15, %s937_s17  ;;  %v133_v19 = vadd.f32 0.5, %v132_v18 }
 0x187   :  { %v142_v20 = vpop.permute.xlu0 %141 }
 0x188   :  { %v144_v21 = vmul.f32 %v142_v20, %v133_v19 }
 0x18a   :  { %146 = vrot.lane.b32.xlu1 %v144_v21, %s937_s17 }
 0x18b   :  { %v137_v22 = vpop.permute.xlu0 %136 }
 0x18c   :  { %v139_v23 = vmul.f32 %v137_v22, %v133_v19 }
 0x1fc   :  { %v147_v24 = vpop.permute.xlu1 %146 }
 0x1fd   :  { %v149_v25 = vadd.f32 %v147_v24, %v139_v23 }
 0x1ff   :  { %815 = vtanh.f32 %v149_v25 }
 0x209   :  { %v816_v26 = vpop.eup %815 }
 0x20a   :  { %152 = vrot.lane.b32.xlu1 %v816_v26, %s933_s0 }
 0x27c   :  { %v153_v27 = vpop.permute.xlu1 %152 }
 0x27d   :  { %v1039_v28 = vmul.f32 %v153_v27, %v133_v19 }
 0x27f   :  { %v156_v29 = vpack.c.bf16 %v1039_v28, %v1039_v28 }
 0x281   :  { %158 = vrot.lane.b32.xlu0 %v156_v29, %s937_s17 }
 0x2f3   :  { %v159_v30 = vpop.permute.xlu0 %158 }
 0x2f4   :  { %749 = vmatmul.mubr.msk.bf16.vlgmr.msra.gmra.mrb[0].mxu1 %vm52_vm0, %v159_v30 }
 0x2f5   :  { %761 = vmatpush3.bf16.msra.mxu1 %v1006_v1  ;;  %764 = vmatprep.mubr.msk.bf16.mxu1 %vm936_vm1, %v935_v0 }
 0x2f6   :  { %762 = vmatprep.subr.bf16.mxu1 %v935_v0 }
 0x2f9   :  { %763 = vmatpush3.bf16.msra.mxu1 %v1009_v2 }
 0x2fa   :  { %776 = vmatprep.subr.bf16.mxu1 %v935_v0 }
 0x3c7   :  { %v197_v31 = vpop.f32.mrb[0].mxu1 }
 0x3c8   :  { %v198_v32 = vadd.f32 %v1029_v6, %v197_v31  ;;  %v750_v33 = vpop.f32.mrb[1].mxu1 }
 0x3c9   :  { %v200_v34 = vpop.f32.mrb[2].mxu1 }
 0x3ca   :  { %817 = vtanh.f32 %v198_v32  ;;  %v751_v35 = vpop.f32.mrb[3].mxu1  ;;  %v203_v37 = vmul.f32 0.5, %v198_v32 }
 0x3cc   :  { %819 = vtanh.f32 %v203_v37 }
 0x3d4   :  { %v818_v36 = vpop.eup %817 }
 0x3d5   :  { %210 = vrot.lane.b32.xlu1 %v818_v36, %s933_s0 }
 0x3d6   :  { %v820_v38 = vpop.eup %819 }
 0x3d7   :  { %v205_v39 = vmul.f32 0.5, %v820_v38 }
 0x3d9   :  { %v206_v40 = vadd.f32 0.5, %v205_v39 }
 0x3db   :  { %v208_v43 = vmul.f32 %v206_v40, %v149_v25 }
 0x447   :  { %v211_v41 = vpop.permute.xlu1 %210 }
 0x448   :  { %v213_v42 = vmul.f32 %v211_v41, %v206_v40 }
 0x44a   :  { %215 = vrot.lane.b32.xlu0 %v213_v42, %s937_s17 }
 0x4bc   :  { %v216_v44 = vpop.permute.xlu0 %215 }
 0x4bd   :  { %v218_v45 = vadd.f32 %v216_v44, %v208_v43 }
 0x4bf   :  { %821 = vtanh.f32 %v218_v45 }
 0x4c9   :  { %v822_v46 = vpop.eup %821 }
 0x4ca   :  { %221 = vrot.lane.b32.xlu1 %v822_v46, %s933_s0 }
 0x53c   :  { %v222_v47 = vpop.permute.xlu1 %221 }
 0x53d   :  { %v1055_v48 = vmul.f32 %v222_v47, %v206_v40 }
 0x53f   :  { %v225_v49 = vpack.c.bf16 %v1055_v48, %v1055_v48 }
 0x541   :  { %227 = vrot.lane.b32.xlu0 %v225_v49, %s937_s17 }
 0x5b3   :  { %v228_v50 = vpop.permute.xlu0 %227 }
 0x5b4   :  { %757 = vmatmul.mubr.msk.bf16.vlgmr.msra.gmra.mrb[4].mxu0 %vm52_vm0, %v228_v50 }
 0x5b5   :  { %769 = vmatpush3.bf16.msra.mxu0 %v1006_v1  ;;  %772 = vmatprep.mubr.msk.bf16.mxu0 %vm936_vm1, %v935_v0 }
 0x5b6   :  { %770 = vmatprep.subr.bf16.mxu0 %v935_v0 }
 0x5b9   :  { %771 = vmatpush3.bf16.msra.mxu0 %v1009_v2 }
 0x5ba   :  { %784 = vmatprep.subr.bf16.mxu0 %v935_v0 }
 0x687   :  { %v266_v51 = vpop.f32.mrb[4].mxu0 }
 0x688   :  { %v267_v52 = vadd.f32 %v1029_v6, %v266_v51  ;;  %v758_v53 = vpop.f32.mrb[5].mxu0 }
 0x689   :  { %v269_v54 = vpop.f32.mrb[6].mxu0 }
 0x68a   :  { %823 = vtanh.f32 %v267_v52  ;;  %v759_v55 = vpop.f32.mrb[7].mxu0  ;;  %v272_v57 = vmul.f32 0.5, %v267_v52 }
 0x68c   :  { %825 = vtanh.f32 %v272_v57 }
 0x694   :  { %v824_v56 = vpop.eup %823 }
 0x695   :  { %279 = vrot.lane.b32.xlu1 %v824_v56, %s933_s0 }
 0x696   :  { %v826_v58 = vpop.eup %825 }
 0x697   :  { %v274_v59 = vmul.f32 0.5, %v826_v58 }
 0x699   :  { %v275_v60 = vadd.f32 0.5, %v274_v59 }
 0x69b   :  { %v277_v63 = vmul.f32 %v275_v60, %v218_v45 }
 0x707   :  { %v280_v61 = vpop.permute.xlu1 %279 }
 0x708   :  { %v282_v62 = vmul.f32 %v280_v61, %v275_v60 }
 0x70a   :  { %284 = vrot.lane.b32.xlu0 %v282_v62, %s937_s17 }
 0x77c   :  { %v285_v3 = vpop.permute.xlu0 %284 }
 0x77d   :  { %v287_v4 = vadd.f32 %v285_v3, %v277_v63 }
 0x77f   :  { %827 = vtanh.f32 %v287_v4 }
 0x789   :  { %v828_v5 = vpop.eup %827 }
 0x78a   :  { %290 = vrot.lane.b32.xlu1 %v828_v5, %s933_s0 }
 0x7fc   :  { %v291_v7 = vpop.permute.xlu1 %290 }
 0x7fd   :  { %v1071_v8 = vmul.f32 %v291_v7, %v275_v60 }
 0x7ff   :  { %v294_v9 = vpack.c.bf16 %v1071_v8, %v1071_v8 }
 0x801   :  { %296 = vrot.lane.b32.xlu0 %v294_v9, %s937_s17 }
 0x873   :  { %v297_v10 = vpop.permute.xlu0 %296 }
 0x874   :  { %765 = vmatmul.mubr.msk.bf16.vlgmr.msra.gmra.mrb[4].mxu1 %vm52_vm0, %v297_v10 }
 0x875   :  { %777 = vmatpush3.bf16.msra.mxu1 %v1006_v1  ;;  %780 = vmatprep.mubr.msk.bf16.mxu1 %vm936_vm1, %v935_v0 }
 0x876   :  { %778 = vmatprep.subr.bf16.mxu1 %v935_v0 }
 0x879   :  { %779 = vmatpush3.bf16.msra.mxu1 %v1009_v2 }
 0x87a   :  { %792 = vmatprep.subr.bf16.mxu1 %v935_v0 }
 0x947   :  { %v335_v11 = vpop.f32.mrb[4].mxu1 }
 0x948   :  { %v336_v12 = vadd.f32 %v1029_v6, %v335_v11  ;;  %v766_v13 = vpop.f32.mrb[5].mxu1 }
 0x949   :  { %v338_v14 = vpop.f32.mrb[6].mxu1 }
 0x94a   :  { %829 = vtanh.f32 %v336_v12  ;;  %v767_v15 = vpop.f32.mrb[7].mxu1  ;;  %v341_v17 = vmul.f32 0.5, %v336_v12 }
 0x94c   :  { %831 = vtanh.f32 %v341_v17 }
 0x954   :  { %v830_v16 = vpop.eup %829 }
 0x955   :  { %348 = vrot.lane.b32.xlu1 %v830_v16, %s933_s0 }
 0x956   :  { %v832_v18 = vpop.eup %831 }
 0x957   :  { %v343_v19 = vmul.f32 0.5, %v832_v18 }
 0x959   :  { %v344_v20 = vadd.f32 0.5, %v343_v19 }
 0x95b   :  { %v346_v23 = vmul.f32 %v344_v20, %v287_v4 }
 0x9c7   :  { %v349_v21 = vpop.permute.xlu1 %348 }
 0x9c8   :  { %v351_v22 = vmul.f32 %v349_v21, %v344_v20 }
 0x9ca   :  { %353 = vrot.lane.b32.xlu0 %v351_v22, %s937_s17 }
 0xa3c   :  { %v354_v24 = vpop.permute.xlu0 %353 }
 0xa3d   :  { %v356_v25 = vadd.f32 %v354_v24, %v346_v23 }
 0xa3f   :  { %833 = vtanh.f32 %v356_v25 }
 0xa49   :  { %v834_v26 = vpop.eup %833 }
 0xa4a   :  { %359 = vrot.lane.b32.xlu1 %v834_v26, %s933_s0 }
 0xabc   :  { %v360_v27 = vpop.permute.xlu1 %359 }
 0xabd   :  { %v1087_v29 = vmul.f32 %v360_v27, %v344_v20 }
 0xabf   :  { %v381_v30 = vpack.c.bf16 %v1087_v29, %v1087_v29 }
 0xac1   :  { %383 = vrot.lane.b32.xlu0 %v381_v30, %s937_s17 }
 0xb33   :  { %v384_v31 = vpop.permute.xlu0 %383 }
 0xb34   :  { %773 = vmatmul.mubr.msk.bf16.vlgmr.msra.gmra.mrb[8].mxu0 %vm52_vm0, %v384_v31 }
 0xb35   :  { %785 = vmatpush3.bf16.msra.mxu0 %v1006_v1  ;;  %788 = vmatprep.mubr.msk.bf16.mxu0 %vm936_vm1, %v935_v0 }
 0xb36   :  { %786 = vmatprep.subr.bf16.mxu0 %v935_v0 }
 0xb39   :  { %787 = vmatpush3.bf16.msra.mxu0 %v1009_v2 }
 0xc07   :  { %v422_v32 = vpop.f32.mrb[8].mxu0 }
 0xc08   :  { %v423_v33 = vadd.f32 %v1029_v6, %v422_v32  ;;  %v774_v34 = vpop.f32.mrb[9].mxu0 }
 0xc09   :  { %v425_v35 = vpop.f32.mrb[10].mxu0 }
 0xc0a   :  { %835 = vtanh.f32 %v423_v33  ;;  %v775_v36 = vpop.f32.mrb[11].mxu0  ;;  %v428_v38 = vmul.f32 0.5, %v423_v33 }
 0xc0c   :  { %837 = vtanh.f32 %v428_v38 }
 0xc14   :  { %v836_v37 = vpop.eup %835 }
 0xc15   :  { %435 = vrot.lane.b32.xlu1 %v836_v37, %s933_s0 }
 0xc16   :  { %v838_v39 = vpop.eup %837 }
 0xc17   :  { %v430_v40 = vmul.f32 0.5, %v838_v39 }
 0xc19   :  { %v431_v41 = vadd.f32 0.5, %v430_v40 }
 0xc1b   :  { %v433_v44 = vmul.f32 %v431_v41, %v356_v25 }
 0xc87   :  { %v436_v42 = vpop.permute.xlu1 %435 }
 0xc88   :  { %v438_v43 = vmul.f32 %v436_v42, %v431_v41 }
 0xc8a   :  { %440 = vrot.lane.b32.xlu0 %v438_v43, %s937_s17 }
 0xcfc   :  { %v441_v45 = vpop.permute.xlu0 %440 }
 0xcfd   :  { %v443_v46 = vadd.f32 %v441_v45, %v433_v44 }
 0xcff   :  { %839 = vtanh.f32 %v443_v46 }
 0xd09   :  { %v840_v47 = vpop.eup %839 }
 0xd0a   :  { %446 = vrot.lane.b32.xlu1 %v840_v47, %s933_s0 }
 0xd7c   :  { %v447_v49 = vpop.permute.xlu1 %446 }
 0xd7d   :  { %v1102_v50 = vmul.f32 %v447_v49, %v431_v41 }
 0xd7f   :  { %v450_v51 = vpack.c.bf16 %v1102_v50, %v1102_v50 }
 0xd81   :  { %452 = vrot.lane.b32.xlu0 %v450_v51, %s937_s17 }
 0xdf3   :  { %v453_v52 = vpop.permute.xlu0 %452 }
 0xdf4   :  { %781 = vmatmul.mubr.msk.bf16.vlgmr.msra.gmra.mrb[8].mxu1 %vm52_vm0, %v453_v52 }
 0xdf5   :  { %793 = vmatpush3.bf16.msra.mxu1 %v1006_v1  ;;  %796 = vmatprep.mubr.msk.bf16.mxu1 %vm936_vm1, %v935_v0 }
 0xdf6   :  { %794 = vmatprep.subr.bf16.mxu1 %v935_v0 }
 0xdf9   :  { %795 = vmatpush3.bf16.msra.mxu1 %v1009_v2 }
 0xec7   :  { %v491_v53 = vpop.f32.mrb[8].mxu1 }
 0xec8   :  { %v492_v54 = vadd.f32 %v1029_v6, %v491_v53  ;;  %v782_v55 = vpop.f32.mrb[9].mxu1 }
 0xec9   :  { %v494_v56 = vpop.f32.mrb[10].mxu1 }
 0xeca   :  { %841 = vtanh.f32 %v492_v54  ;;  %v783_v57 = vpop.f32.mrb[11].mxu1  ;;  %v497_v59 = vmul.f32 0.5, %v492_v54 }
 0xecc   :  { %843 = vtanh.f32 %v497_v59 }
 0xed4   :  { %v842_v58 = vpop.eup %841 }
 0xed5   :  { %504 = vrot.lane.b32.xlu1 %v842_v58, %s933_s0 }
 0xed6   :  { %v844_v1 = vpop.eup %843 }
 0xed7   :  { %v499_v60 = vmul.f32 0.5, %v844_v1 }
 0xed9   :  { %v500_v61 = vadd.f32 0.5, %v499_v60 }
 0xedb   :  { %v502_v0 = vmul.f32 %v500_v61, %v443_v46 }
 0xf47   :  { %v505_v62 = vpop.permute.xlu1 %504 }
 0xf48   :  { %v507_v63 = vmul.f32 %v505_v62, %v500_v61 }
 0xf4a   :  { %509 = vrot.lane.b32.xlu0 %v507_v63, %s937_s17 }
 0xfbc   :  { %v510_v2 = vpop.permute.xlu0 %509 }
 0xfbd   :  { %v512_v3 = vadd.f32 %v510_v2, %v502_v0 }
 0xfbf   :  { %845 = vtanh.f32 %v512_v3 }
 0xfc9   :  { %v846_v4 = vpop.eup %845 }
 0xfca   :  { %515 = vrot.lane.b32.xlu1 %v846_v4, %s933_s0 }
0x103c   :  { %v516_v5 = vpop.permute.xlu1 %515 }
0x103d   :  { %v518_v7 = vmul.f32 %v516_v5, %v500_v61 }
0x103f   :  { %v519_v9 = vpack.c.bf16 %v518_v7, %v518_v7 }
0x1041   :  { %521 = vrot.lane.b32.xlu0 %v519_v9, %s937_s17 }
0x10b3   :  { %v522_v10 = vpop.permute.xlu0 %521 }
0x10b4   :  { %789 = vmatmul.mubr.msk.bf16.vlgmr.msra.gmra.mrb[12].mxu0 %vm52_vm0, %v522_v10 }
0x1187   :  { %v560_v11 = vpop.f32.mrb[12].mxu0 }
0x1188   :  { %v561_v12 = vadd.f32 %v1029_v6, %v560_v11  ;;  %v790_v13 = vpop.f32.mrb[13].mxu0 }
0x1189   :  { %v563_v14 = vpop.f32.mrb[14].mxu0 }
0x118a   :  { %847 = vtanh.f32 %v561_v12  ;;  %v791_v15 = vpop.f32.mrb[15].mxu0  ;;  %v566_v17 = vmul.f32 0.5, %v561_v12 }
0x118c   :  { %849 = vtanh.f32 %v566_v17 }
0x1194   :  { %v848_v16 = vpop.eup %847 }
0x1195   :  { %573 = vrot.lane.b32.xlu1 %v848_v16, %s933_s0 }
0x1196   :  { %v850_v18 = vpop.eup %849 }
0x1197   :  { %v568_v19 = vmul.f32 0.5, %v850_v18 }
0x1199   :  { %v569_v20 = vadd.f32 0.5, %v568_v19 }
0x119b   :  { %v571_v23 = vmul.f32 %v569_v20, %v512_v3 }
0x1207   :  { %v574_v21 = vpop.permute.xlu1 %573 }
0x1208   :  { %v576_v22 = vmul.f32 %v574_v21, %v569_v20 }
0x120a   :  { %578 = vrot.lane.b32.xlu0 %v576_v22, %s937_s17 }
0x127c   :  { %v579_v24 = vpop.permute.xlu0 %578 }
0x127d   :  { %v581_v25 = vadd.f32 %v579_v24, %v571_v23 }
0x127f   :  { %851 = vtanh.f32 %v581_v25 }
0x1289   :  { %v852_v26 = vpop.eup %851 }
0x128a   :  { %584 = vrot.lane.b32.xlu1 %v852_v26, %s933_s0 }
0x12fc   :  { %v585_v27 = vpop.permute.xlu1 %584 }
0x12fd   :  { %v587_v30 = vmul.f32 %v585_v27, %v569_v20 }
0x12ff   :  { %v588_v31 = vpack.c.bf16 %v587_v30, %v587_v30 }
0x1301   :  { %590 = vrot.lane.b32.xlu0 %v588_v31, %s937_s17 }
0x1373   :  { %v591_v32 = vpop.permute.xlu0 %590 }
0x1374   :  { %797 = vmatmul.mubr.msk.bf16.vlgmr.msra.gmra.mrb[12].mxu1 %vm52_vm0, %v591_v32 }
0x1447   :  { %v629_v33 = vpop.f32.mrb[12].mxu1 }
0x1448   :  { %v630_v34 = vadd.f32 %v1029_v6, %v629_v33  ;;  %v798_v35 = vpop.f32.mrb[13].mxu1 }
0x1449   :  { %v632_v36 = vpop.f32.mrb[14].mxu1 }
0x144a   :  { %853 = vtanh.f32 %v630_v34  ;;  %v799_v37 = vpop.f32.mrb[15].mxu1  ;;  %v635_v39 = vmul.f32 0.5, %v630_v34 }
0x144c   :  { %855 = vtanh.f32 %v635_v39 }
0x1454   :  { %v854_v38 = vpop.eup %853 }
0x1455   :  { %642 = vrot.lane.b32.xlu1 %v854_v38, %s933_s0 }
0x1456   :  { %v856_v40 = vpop.eup %855 }
0x1457   :  { %v637_v41 = vmul.f32 0.5, %v856_v40 }
0x1459   :  { %v638_v42 = vadd.f32 0.5, %v637_v41 }
0x145b   :  { %v640_v6 = vmul.f32 %v638_v42, %v581_v25 }
0x14c7   :  { %v643_v43 = vpop.permute.xlu1 %642 }
0x14c8   :  { %v645_v44 = vmul.f32 %v643_v43, %v638_v42 }
0x14ca   :  { %647 = vrot.lane.b32.xlu0 %v645_v44, %s937_s17 }
0x14ce   :  { %364 = vrot.lane.b32.xlu0 %v1087_v29, %s937_s17 }
0x14d2   :  { %372 = vrot.lane.b32.xlu0 %v1055_v48, %s938_s2 }
0x153c   :  { %v648_v45 = vpop.permute.xlu0 %647 }
0x153d   :  { %v650_v46 = vadd.f32 %v648_v45, %v640_v6 }
0x153f   :  { %857 = vtanh.f32 %v650_v46 }
0x1540   :  { %v365_v49 = vpop.permute.xlu0 %364 }
0x1544   :  { %v373_v29 = vpop.permute.xlu0 %372 }
0x1549   :  { %v858_v47 = vpop.eup %857 }
0x154a   :  { %653 = vrot.lane.b32.xlu1 %v858_v47, %s933_s0 }
0x154e   :  { %368 = vrot.lane.b32.xlu1 %v1071_v8, %s933_s0 }
0x1552   :  { %662 = vrot.lane.b32.xlu1 %v587_v30, %s933_s0 }
0x1556   :  { %666 = vrot.lane.b32.xlu1 %v518_v7, %s938_s2 }
0x15bc   :  { %v654_v51 = vpop.permute.xlu1 %653 }
0x15bd   :  { %v656_v52 = vmul.f32 %v654_v51, %v638_v42 }
0x15bf   :  { %658 = vrot.lane.b32.xlu0 %v656_v52, %s937_s17 }
0x15c0   :  { %v369_v48 = vpop.permute.xlu1 %368 }
0x15c1   :  { %v375_v53 = vsel %vm52_vm0, %v365_v49, %v369_v48 }
0x15c2   :  { %v377_v54 = vsel %vm376_vm2, %v375_v53, %v373_v29 }
0x15c3   :  { %675 = vrot.lane.b32.xlu0 %v650_v46, %s938_s2  ;;  %v379_v8 = vsel %vm378_vm3, %v377_v54, %v1039_v28 }
0x15c4   :  { %380 = vst [vmem:[#allocation9 + $0x8] sm:$0xff] %v379_v8  ;;  %v663_v55 = vpop.permute.xlu1 %662 }
0x15c8   :  { %v667_v57 = vpop.permute.xlu1 %666 }
0x1631   :  { %v659_v56 = vpop.permute.xlu0 %658 }
0x1632   :  { %v669_v58 = vsel %vm52_vm0, %v659_v56, %v663_v55  ;;  %673 = vst.msk [vmem:[#allocation2] sm:$0xff] %vm52_vm0, %v659_v56 }
0x1633   :  { %v670_v59 = vsel %vm376_vm2, %v669_v58, %v667_v57 }
0x1634   :  { %v671_v1 = vsel %vm378_vm3, %v670_v59, %v1102_v50 }
0x1635   :  { %v676_v60 = vpop.permute.xlu0 %675  ;;  %672 = vst [vmem:[#allocation9] sm:$0xff] %v671_v1 }
0x1636   :  { %678 = vst.msk [vmem:[#allocation3] sm:$0xff] %vm52_vm0, %v676_v60 }
0x1637   :  { %914 = shalt.err (!%p911_p6)
}
0x1638   :  { %s915_s22 = scalar_lea.hbm %s1162_s4, 256 }
0x1639   :  { %p916_p7 = scmp.ne.s32.totalorder %s1162_s4, %s915_s22  ;;  %p919_p8 = scmp.lt.u32.totalorder %s915_s22, %s1162_s4 }
0x163b   :  { %p921_p9 = pnand %p919_p8, %p916_p7 }
0x163d   :  { %924 = shalt.err (!%p921_p9)
}
0x163e   :  { %692 = dma.vmem_to_hbm [thread:$0]  %s690_s18, 256, %s1162_s4, [#allocation6]  }
0x163f   :  { %929 = dma.done.wait [#allocation6], 256  }
0x1640   :  { %930 = vsyncadd [#allocation6], 4294967040 }
0x1641   :  { %696 = vsyncpa [#allocation5], 1 }
0x1642   :  { %697 = vsyncpa [#allocation8], 1 }
0x1643   :  { %698 = vsyncpa [#allocation6], 1 }

</bundles_post_ra>
